<compile_context>
chip_gen: v7x
topology: tpu7x:2x2x1
jax: 0.10.0
libtpu: 0.0.40
codegen_flags: <defaults>
</compile_context>

<pallas_src>
import functools
import math

import jax
import jax.numpy as jnp
from jax.experimental import pallas as pl
from jax.experimental.pallas import tpu as pltpu

_LANE = 128          # feature dims padded to a multiple of 128 (lane-dense)
_SUBLANE_BF16 = 16   # bf16 sublane packing -> batch tile multiple of 16
_MAX_TB = 256        # fills the 256-row MXU on v6e/v7x; fine on v5e (2 pushes)
_W0_TILE_BYTES = 4 * 1024 * 1024   # target per-buffer size for K-tiled layer-0 weight


def _round_up(x, m):
    return ((x + m - 1) // m) * m


def _apply_act(y, act):
    if act == "tanh":
        return jnp.tanh(y)
    if act == "sigmoid":
        return jax.nn.sigmoid(y)
    if act == "relu":
        return jnp.maximum(y, 0.0)
    return y  # "none"


def _vmem_limit_bytes(required):
    """Size the scoped-VMEM limit from actual needs, capped per generation."""
    try:
        phys = int(pltpu.get_tpu_info().vmem_capacity_bytes)
    except Exception:
        phys = 64 << 20  # conservative (v7x per-TensorCore)
    cap = max(32 << 20, min(phys - (16 << 20), 100 << 20))
    return int(min(max(required, 16 << 20), cap))


def _resident_spec(shape):
    """Constant-index, single-buffered (fetched once) VMEM-resident operand."""
    try:
        return pl.BlockSpec(shape, lambda i, k: (0, 0), pipeline_mode=pl.Buffered(1))
    except TypeError:  # older jax without pipeline_mode kwarg
        return pl.BlockSpec(shape, lambda i, k: (0, 0))


def _fused_mlp_kernel(*refs, n_layers, activations):
    """Whole-stack fused MLP with a K-tiled first layer.

    refs = (x, w0, b0, w1, b1, ..., w_{L-1}, b_{L-1}, o_ref, acc_ref)
    grid = (batch_tiles, k_tiles_of_layer0); layer 0 accumulates into an f32
    VMEM scratch across the inner (arbitrary) k axis; layers 1..L-1 and the
    single HBM store run only on the last k step.  Intermediates never leave
    the chip.
    """
    x_ref = refs[0]
    o_ref = refs[1 + 2 * n_layers]
    acc_ref = refs[2 + 2 * n_layers]

    k = pl.program_id(1)
    n_k = pl.num_programs(1)

    @pl.when(k == 0)
    def _():
        acc_ref[...] = jnp.zeros_like(acc_ref)

    # Layer 0 partial matmul (bf16 MXU, f32 accumulate in VMEM scratch).
    acc_ref[...] += jnp.dot(x_ref[...], refs[1][...],
                            preferred_element_type=jnp.float32)

    @pl.when(k == n_k - 1)
    def _():
        y = _apply_act(acc_ref[...] + refs[2][...], activations[0])
        cur = y.astype(jnp.bfloat16) if n_layers > 1 else y
        for i in range(1, n_layers):
            w = refs[1 + 2 * i][...]           # bf16 (d_in_pad, d_out_pad)
            b = refs[2 + 2 * i][...]           # f32  (1, d_out_pad)
            y = _apply_act(
                jnp.dot(cur, w, preferred_element_type=jnp.float32) + b,
                activations[i])
            cur = y.astype(jnp.bfloat16) if i < n_layers - 1 else y
        o_ref[...] = cur.astype(o_ref.dtype)   # lane-dense (128-padded) store


def fused_poly_linear(x_pad, params_pad, activations, *, tb,
                      out_dtype=jnp.float32):
    """Run the whole padded stack in one pallas_call.

    x_pad:      (B_pad, d0_pad) bf16, B_pad % tb == 0, d0_pad % 128 == 0
    params_pad: list of (w_pad bf16 (din_pad, dout_pad), b_pad f32 (1, dout_pad))
    """
    n_layers = len(params_pad)
    B_pad, d0_pad = x_pad.shape
    d1_pad = params_pad[0][0].shape[1]
    d_last_pad = params_pad[-1][0].shape[1]
    n_b = B_pad // tb

    # --- K tile for layer 0: keep its weight tile around _W0_TILE_BYTES. ---
    max_tk = max(_LANE, (_W0_TILE_BYTES // (d1_pad * 2)) // _LANE * _LANE)
    tk = min(d0_pad, max_tk)
    while d0_pad % tk != 0:       # terminates: 128 always divides d0_pad
        tk -= _LANE
    n_k = d0_pad // tk

    # --- Block specs -------------------------------------------------------
    in_specs = [pl.BlockSpec((tb, tk), lambda i, k: (i, k))]          # x
    if n_k > 1:
        # changing index across k -> keep default double buffering (pipelines)
        in_specs.append(pl.BlockSpec((tk, d1_pad), lambda i, k: (k, 0)))
    else:
        in_specs.append(_resident_spec((tk, d1_pad)))
    in_specs.append(_resident_spec(params_pad[0][1].shape))           # b0
    for w, b in params_pad[1:]:
        in_specs.append(_resident_spec(w.shape))
        in_specs.append(_resident_spec(b.shape))
    out_spec = pl.BlockSpec((tb, d_last_pad), lambda i, k: (i, 0))

    # --- Cost estimate & VMEM budget ---------------------------------------
    out_itemsize = jnp.dtype(out_dtype).itemsize
    flops = 0
    transcendentals = 0
    bytes_accessed = x_pad.size * x_pad.dtype.itemsize
    for (w, b), act in zip(params_pad, activations):
        flops += 2 * B_pad * w.shape[0] * w.shape[1]
        bytes_accessed += w.size * w.dtype.itemsize + b.size * b.dtype.itemsize
        if act in ("tanh", "sigmoid"):
            transcendentals += B_pad * w.shape[1]
    bytes_accessed += B_pad * d_last_pad * out_itemsize

    max_dim = max(w.shape[1] for w, _ in params_pad)
    vmem = 2 * tb * tk * 2                                   # x tile, 2 bufs
    vmem += (2 if n_k > 1 else 1) * tk * d1_pad * 2          # w0 tile(s)
    vmem += sum(w.size * 2 for w, _ in params_pad[1:])       # resident weights
    vmem += sum(b.size * 4 for _, b in params_pad)           # resident biases
    vmem += 2 * tb * d_last_pad * out_itemsize               # out tile, 2 bufs
    vmem += tb * d1_pad * 4                                  # f32 accumulator
    vmem += 2 * tb * max_dim * 4                             # intermediates
    vmem += 4 << 20                                          # slack

    kernel = functools.partial(
        _fused_mlp_kernel, n_layers=n_layers, activations=tuple(activations))

    return pl.pallas_call(
        kernel,
        out_shape=jax.ShapeDtypeStruct((B_pad, d_last_pad), out_dtype),
        grid_spec=pltpu.PrefetchScalarGridSpec(
            num_scalar_prefetch=0,
            grid=(n_b, n_k),
            in_specs=in_specs,
            out_specs=out_spec,
            scratch_shapes=[pltpu.VMEM((tb, d1_pad), jnp.float32)]),
        compiler_params=pltpu.CompilerParams(
            dimension_semantics=("parallel", "arbitrary"),
            vmem_limit_bytes=_vmem_limit_bytes(vmem)),
        cost_estimate=pl.CostEstimate(
            flops=flops,
            transcendentals=transcendentals,
            bytes_accessed=bytes_accessed),
    )(x_pad, *[t for wb in params_pad for t in wb])


class PolyLinearPallas:
    """JAX/Pallas port of PolyLinear (fused single-kernel forward).

    activation / output_activation are strings: "tanh", "relu", "sigmoid",
    "none".  Weights are stored zero-padded to 128-multiple feature dims in
    bf16; biases are stored as (1, D2_pad) f32.
    """

    def __init__(self, layer_config, activation="tanh", output_activation=None,
                 input_dropout=None, key=None, out_dtype=jnp.float32):
        assert len(layer_config) > 1
        self.layer_config = list(layer_config)
        self.n_layers = len(layer_config) - 1
        self.activations = [activation] * (self.n_layers - 1) + [
            output_activation if output_activation is not None else "none"
        ]
        self.out_dtype = out_dtype
        # TODO(synk): input_dropout is identity at inference; training-mode
        # dropout (RNG masking) is not implemented in the kernel.
        self.input_dropout = input_dropout

        self.padded_dims = [_round_up(d, _LANE) for d in self.layer_config]

        if key is None:
            key = jax.random.PRNGKey(0)
        self.params = []  # [(w_pad bf16 (d1p,d2p), b_pad f32 (1,d2p)), ...]
        for i, (d1, d2) in enumerate(zip(layer_config[:-1], layer_config[1:])):
            d1p, d2p = self.padded_dims[i], self.padded_dims[i + 1]
            kw, kb = jax.random.split(jax.random.fold_in(key, i))
            bound = 1.0 / math.sqrt(d1)  # nn.Linear default init range
            w = jax.random.uniform(kw, (d1, d2), jnp.float32, -bound, bound)
            b = jax.random.uniform(kb, (d2,), jnp.float32, -bound, bound)
            # Zero-pad: padded rows/cols contribute nothing to real outputs.
            w_pad = jnp.zeros((d1p, d2p), jnp.float32).at[:d1, :d2].set(w)
            b_pad = jnp.zeros((1, d2p), jnp.float32).at[0, :d2].set(b)
            self.params.append((w_pad.astype(jnp.bfloat16), b_pad))

    def _pick_tb(self, B):
        # Pad the batch up to the tile instead of requiring divisibility:
        # tb = round_up(ceil(B / n_tiles), 16), capped at _MAX_TB.
        n_tiles = pl.cdiv(B, _MAX_TB)
        tb = _round_up(pl.cdiv(B, n_tiles), _SUBLANE_BF16)
        return min(tb, _MAX_TB)

    def __call__(self, x):
        B, d0 = x.shape
        assert d0 == self.layer_config[0]
        tb = self._pick_tb(B)
        B_pad = _round_up(B, tb)
        d0p = self.padded_dims[0]
        pad_b, pad_d = B_pad - B, d0p - d0
        if pad_b or pad_d:
            x = jnp.pad(x, ((0, pad_b), (0, pad_d)))
        x_pad = x.astype(jnp.bfloat16)
        out_pad = fused_poly_linear(x_pad, self.params, self.activations,
                                    tb=tb, out_dtype=self.out_dtype)
        # Slice off batch/feature padding (padded lanes may hold e.g. 0.5
        # after a sigmoid; they are never read).
        return out_pad[:B, : self.layer_config[-1]]

    def reference(self, x):
        """Pure-JAX reference at matching (bf16 matmul / f32 epilogue) precision."""
        cur = x.astype(jnp.bfloat16)
        for i, (w_pad, b_pad) in enumerate(self.params):
            d1, d2 = self.layer_config[i], self.layer_config[i + 1]
            w = w_pad[:d1, :d2]
            b = b_pad[0, :d2]
            y = jnp.dot(cur, w, preferred_element_type=jnp.float32) + b
            y = _apply_act(y, self.activations[i])
            cur = y.astype(jnp.bfloat16) if i < self.n_layers - 1 else y
        return cur.astype(self.out_dtype)


if __name__ == "__main__":
    key = jax.random.PRNGKey(0)
    k_in, k_model = jax.random.split(key)

    # Small shapes consistent with the module: a VAE encoder-like stack
    # [input_dim, hidden, hidden2, latent] acting on (batch, input_dim).
    batch = 8
    layer_config = [32, 64, 48, 16]

    model = PolyLinearPallas(layer_config, activation="tanh",
                             output_activation="sigmoid",
                             input_dropout=None, key=k_model)

    x = jax.random.normal(k_in, (batch, layer_config[0]), jnp.float32)

    out = jax.block_until_ready(model(x))
    ref = model.reference(x)

    assert out.shape == (batch, layer_config[-1]), out.shape
    assert jnp.allclose(out, ref, atol=2e-3, rtol=2e-3), "mismatch vs reference"

    print("KERNEL_OK")
</pallas_src>

<mosaic_0001>
module attributes {stable_mosaic.version = 11 : i64} {
  func.func @_fused_mlp_kernel(%arg0: i32, %arg1: i32, %arg2: memref<16x128xbf16, #tpu.memory_space<vmem>>, %arg3: memref<128x128xbf16, #tpu.memory_space<vmem>>, %arg4: memref<1x128xf32, #tpu.memory_space<vmem>>, %arg5: memref<128x128xbf16, #tpu.memory_space<vmem>>, %arg6: memref<1x128xf32, #tpu.memory_space<vmem>>, %arg7: memref<128x128xbf16, #tpu.memory_space<vmem>>, %arg8: memref<1x128xf32, #tpu.memory_space<vmem>>, %arg9: memref<16x128xf32, #tpu.memory_space<vmem>>, %arg10: memref<16x128xf32, #tpu.memory_space<vmem>>) attributes {dimension_semantics = [#tpu.dimension_semantics<parallel>, #tpu.dimension_semantics<arbitrary>], iteration_bounds = array<i64: 1, 1>, scalar_prefetch = 0 : i64, scratch_operands = 1 : i64, tpu.core_type = #tpu.core_type<tc>, window_params = [{transform_indices = @transform_0, window_bounds = array<i64: 16, 128>}, {pipeline_mode = #tpu.pipeline_mode<synchronous>, transform_indices = @transform_1, window_bounds = array<i64: 128, 128>}, {pipeline_mode = #tpu.pipeline_mode<synchronous>, transform_indices = @transform_2, window_bounds = array<i64: 1, 128>}, {pipeline_mode = #tpu.pipeline_mode<synchronous>, transform_indices = @transform_3, window_bounds = array<i64: 128, 128>}, {pipeline_mode = #tpu.pipeline_mode<synchronous>, transform_indices = @transform_4, window_bounds = array<i64: 1, 128>}, {pipeline_mode = #tpu.pipeline_mode<synchronous>, transform_indices = @transform_5, window_bounds = array<i64: 128, 128>}, {pipeline_mode = #tpu.pipeline_mode<synchronous>, transform_indices = @transform_6, window_bounds = array<i64: 1, 128>}, {transform_indices = @transform_7, window_bounds = array<i64: 16, 128>}]} {
    %c0_i32 = arith.constant 0 : i32
    %0 = arith.cmpi eq, %arg1, %c0_i32 : i32
    %1 = arith.extui %0 : i1 to i32
    %c0_i32_0 = arith.constant 0 : i32
    %2 = arith.cmpi ne, %1, %c0_i32_0 : i32
    scf.if %2 {
      %cst_10 = arith.constant 0.000000e+00 : f32
      %12 = vector.broadcast %cst_10 : f32 to vector<16x128xf32>
      %c0_11 = arith.constant 0 : index
      %c0_12 = arith.constant 0 : index
      %13 = vector.load %arg10[%c0_11, %c0_12] : memref<16x128xf32, #tpu.memory_space<vmem>>, vector<16x128xf32>
      tpu.vector_store %arg10[%c0_11, %c0_12], %12 {strides = array<i32>} : memref<16x128xf32, #tpu.memory_space<vmem>>, vector<16x128xf32>,
    } else {
    }
    %c0 = arith.constant 0 : index
    %c0_1 = arith.constant 0 : index
    %3 = vector.load %arg10[%c0, %c0_1] : memref<16x128xf32, #tpu.memory_space<vmem>>, vector<16x128xf32>
    %c0_2 = arith.constant 0 : index
    %c0_3 = arith.constant 0 : index
    %4 = vector.load %arg2[%c0_2, %c0_3] : memref<16x128xbf16, #tpu.memory_space<vmem>>, vector<16x128xbf16>
    %c0_4 = arith.constant 0 : index
    %c0_5 = arith.constant 0 : index
    %5 = vector.load %arg3[%c0_4, %c0_5] : memref<128x128xbf16, #tpu.memory_space<vmem>>, vector<128x128xbf16>
    %cst = arith.constant dense<0.000000e+00> : vector<16x128xf32>
    %6 = tpu.matmul %4, %5, %cst {dimension_numbers = #tpu.dot_dimension_numbers<[1], [0], [0], [1], [0, 0, 1, 1], [], []>} : vector<16x128xbf16>, vector<128x128xbf16>, vector<16x128xf32> -> vector<16x128xf32>
    %7 = arith.addf %3, %6 : vector<16x128xf32>
    %c0_6 = arith.constant 0 : index
    %c0_7 = arith.constant 0 : index
    %8 = vector.load %arg10[%c0_6, %c0_7] : memref<16x128xf32, #tpu.memory_space<vmem>>, vector<16x128xf32>
    tpu.vector_store %arg10[%c0_6, %c0_7], %7 {strides = array<i32>} : memref<16x128xf32, #tpu.memory_space<vmem>>, vector<16x128xf32>,
    %c0_i32_8 = arith.constant 0 : i32
    %9 = arith.cmpi eq, %arg1, %c0_i32_8 : i32
    %10 = arith.extui %9 : i1 to i32
    %c0_i32_9 = arith.constant 0 : i32
    %11 = arith.cmpi ne, %10, %c0_i32_9 : i32
    scf.if %11 {
      %c0_10 = arith.constant 0 : index
      %c0_11 = arith.constant 0 : index
      %12 = vector.load %arg10[%c0_10, %c0_11] : memref<16x128xf32, #tpu.memory_space<vmem>>, vector<16x128xf32>
      %c0_12 = arith.constant 0 : index
      %c0_13 = arith.constant 0 : index
      %13 = vector.load %arg4[%c0_12, %c0_13] : memref<1x128xf32, #tpu.memory_space<vmem>>, vector<1x128xf32>
      %14 = vector.broadcast %13 : vector<1x128xf32> to vector<16x128xf32>
      %15 = arith.addf %12, %14 : vector<16x128xf32>
      %16 = math.tanh %15 : vector<16x128xf32>
      %17 = arith.truncf %16 : vector<16x128xf32> to vector<16x128xbf16>
      %c0_14 = arith.constant 0 : index
      %c0_15 = arith.constant 0 : index
      %18 = vector.load %arg5[%c0_14, %c0_15] : memref<128x128xbf16, #tpu.memory_space<vmem>>, vector<128x128xbf16>
      %c0_16 = arith.constant 0 : index
      %c0_17 = arith.constant 0 : index
      %19 = vector.load %arg6[%c0_16, %c0_17] : memref<1x128xf32, #tpu.memory_space<vmem>>, vector<1x128xf32>
      %cst_18 = arith.constant dense<0.000000e+00> : vector<16x128xf32>
      %20 = tpu.matmul %17, %18, %cst_18 {dimension_numbers = #tpu.dot_dimension_numbers<[1], [0], [0], [1], [0, 0, 1, 1], [], []>} : vector<16x128xbf16>, vector<128x128xbf16>, vector<16x128xf32> -> vector<16x128xf32>
      %21 = vector.broadcast %19 : vector<1x128xf32> to vector<16x128xf32>
      %22 = arith.addf %20, %21 : vector<16x128xf32>
      %23 = math.tanh %22 : vector<16x128xf32>
      %24 = arith.truncf %23 : vector<16x128xf32> to vector<16x128xbf16>
      %c0_19 = arith.constant 0 : index
      %c0_20 = arith.constant 0 : index
      %25 = vector.load %arg7[%c0_19, %c0_20] : memref<128x128xbf16, #tpu.memory_space<vmem>>, vector<128x128xbf16>
      %c0_21 = arith.constant 0 : index
      %c0_22 = arith.constant 0 : index
      %26 = vector.load %arg8[%c0_21, %c0_22] : memref<1x128xf32, #tpu.memory_space<vmem>>, vector<1x128xf32>
      %cst_23 = arith.constant dense<0.000000e+00> : vector<16x128xf32>
      %27 = tpu.matmul %24, %25, %cst_23 {dimension_numbers = #tpu.dot_dimension_numbers<[1], [0], [0], [1], [0, 0, 1, 1], [], []>} : vector<16x128xbf16>, vector<128x128xbf16>, vector<16x128xf32> -> vector<16x128xf32>
      %28 = vector.broadcast %26 : vector<1x128xf32> to vector<16x128xf32>
      %29 = arith.addf %27, %28 : vector<16x128xf32>
      %30 = arith.negf %29 : vector<16x128xf32>
      %31 = math.exp %30 : vector<16x128xf32>
      %cst_24 = arith.constant 1.000000e+00 : f32
      %32 = vector.broadcast %cst_24 : f32 to vector<16x128xf32>
      %33 = arith.addf %32, %31 : vector<16x128xf32>
      %34 = arith.divf %32, %33 : vector<16x128xf32>
      %c0_25 = arith.constant 0 : index
      %c0_26 = arith.constant 0 : index
      %35 = vector.load %arg9[%c0_25, %c0_26] : memref<16x128xf32, #tpu.memory_space<vmem>>, vector<16x128xf32>
      tpu.vector_store %arg9[%c0_25, %c0_26], %34 {strides = array<i32>} : memref<16x128xf32, #tpu.memory_space<vmem>>, vector<16x128xf32>,
    } else {
    }
    return
  }
  func.func @transform_0(%arg0: i32, %arg1: i32) -> (i32, i32) {
    %c0_i32 = arith.constant 0 : i32
    return %arg0, %arg1 : i32, i32
  }
  func.func @transform_1(%arg0: i32, %arg1: i32) -> (i32, i32) {
    %c0_i32 = arith.constant 0 : i32
    %c0_i32_0 = arith.constant 0 : i32
    %c0_i32_1 = arith.constant 0 : i32
    return %c0_i32, %c0_i32_0 : i32, i32
  }
  func.func @transform_2(%arg0: i32, %arg1: i32) -> (i32, i32) {
    %c0_i32 = arith.constant 0 : i32
    %c0_i32_0 = arith.constant 0 : i32
    %c0_i32_1 = arith.constant 0 : i32
    return %c0_i32, %c0_i32_0 : i32, i32
  }
  func.func @transform_3(%arg0: i32, %arg1: i32) -> (i32, i32) {
    %c0_i32 = arith.constant 0 : i32
    %c0_i32_0 = arith.constant 0 : i32
    %c0_i32_1 = arith.constant 0 : i32
    return %c0_i32, %c0_i32_0 : i32, i32
  }
  func.func @transform_4(%arg0: i32, %arg1: i32) -> (i32, i32) {
    %c0_i32 = arith.constant 0 : i32
    %c0_i32_0 = arith.constant 0 : i32
    %c0_i32_1 = arith.constant 0 : i32
    return %c0_i32, %c0_i32_0 : i32, i32
  }
  func.func @transform_5(%arg0: i32, %arg1: i32) -> (i32, i32) {
    %c0_i32 = arith.constant 0 : i32
    %c0_i32_0 = arith.constant 0 : i32
    %c0_i32_1 = arith.constant 0 : i32
    return %c0_i32, %c0_i32_0 : i32, i32
  }
  func.func @transform_6(%arg0: i32, %arg1: i32) -> (i32, i32) {
    %c0_i32 = arith.constant 0 : i32
    %c0_i32_0 = arith.constant 0 : i32
    %c0_i32_1 = arith.constant 0 : i32
    return %c0_i32, %c0_i32_0 : i32, i32
  }
  func.func @transform_7(%arg0: i32, %arg1: i32) -> (i32, i32) {
    %c0_i32 = arith.constant 0 : i32
    %c0_i32_0 = arith.constant 0 : i32
    return %arg0, %c0_i32 : i32, i32
  }
}

</mosaic_0001>

<bundles_post_ra>
// kernel: tpu_custom_call.1
= control target key start
LH: loop header
LB: loop body
LE: loop exit
PB: predicated region body
PF: predicated region fallthrough
CT: control target
= control target key end

     0   :  { %12 = vsyncpa [#allocation4], 0  ;;  %s948_s0 = inlined_call_operand.hbm [shape: bf16[16,128], index: 0, kind: input, shape index: {}]   ;;  %s949_s1 = inlined_call_operand.hbm [shape: bf16[128,128], index: 1, kind: input, shape index: {}]   ;;  %s950_s2 = inlined_call_operand.vmem [shape: f32[1,128], index: 2, kind: input, shape index: {}]   ;;  %s951_s3 = inlined_call_operand.hbm [shape: bf16[128,128], index: 3, kind: input, shape index: {}]   ;;  %s952_s4 = inlined_call_operand.vmem [shape: f32[1,128], index: 4, kind: input, shape index: {}]   ;;  %s953_s5 = inlined_call_operand.hbm [shape: bf16[128,128], index: 5, kind: input, shape index: {}]   ;;  %s954_s6 = inlined_call_operand.vmem [shape: f32[1,128], index: 6, kind: input, shape index: {}]   ;;  %s955_s7 = inlined_call_operand.hbm [shape: f32[16,128], index: 7, kind: output, shape index: {}]  }
   0x1   :  { %13 = vsyncpa [#allocation7], 0 }
   0x2   :  { %14 = vsyncpa [#allocation10], 0 }
   0x3   :  { %15 = vsyncpa [#allocation5], 0  ;;  %s772_s24 = smov [#allocation6]   ;;  %s773_s26 = smov [#allocation3]  }
   0x4   :  { %s33_s25 = sshll.u32 %s772_s24, 4  ;;  %s21_s27 = sshll.u32 %s773_s26, 4  ;;  %s34_s25 = int_to_ptr.vmem [resolvable:$true] %s33_s25  ;;  %s823_s27 = int_to_ptr.vmem [resolvable:$true] %s21_s27 }
   0x5   :  { %s654_s30 = scalar_lea.hbm %s949_s1, 1024 }
   0x6   :  { %p655_p0 = scmp.ne.s32.totalorder %s949_s1, %s654_s30  ;;  %p658_p1 = scmp.lt.u32.totalorder %s654_s30, %s949_s1 }
   0x8   :  { %p660_p2 = pnand %p658_p1, %p655_p0 }
   0xa   :  { %663 = shalt.err (!%p660_p2)
}
   0xb   :  { %s664_s12 = scalar_lea.vmem %s34_s25, 1024  ;;  %p669_p4 = scmp.lt.s32.totalorder %s34_s25, %s34_s25 }
   0xc   :  { %p665_p3 = scmp.ne.s32.totalorder %s34_s25, %s664_s12  ;;  %p670_p5 = scmp.lt.s32.totalorder %s664_s12, %s664_s12 }
   0xe   :  { %p671_p6 = por %p670_p5, %p669_p4 }
  0x10   :  { %p672_p7 = pnand %p671_p6, %p665_p3 }
  0x12   :  { %675 = shalt.err (!%p672_p7)
}
  0x13   :  { %s774_s13 = smov 64   ;;  %s775_s14 = smov 4  }
  0x14   :  { %39 = dma.hbm_to_vmem [thread:$0]  %s949_s1, 1024, %s34_s25, [#allocation7], %s774_s13, %s774_s13, %s775_s14  }
  0x15   :  { %s676_s19 = scalar_lea.hbm %s948_s0, 128 }
  0x16   :  { %p677_p8 = scmp.ne.s32.totalorder %s948_s0, %s676_s19  ;;  %p680_p9 = scmp.lt.u32.totalorder %s676_s19, %s948_s0 }
  0x18   :  { %p682_p10 = pnand %p680_p9, %p677_p8 }
  0x1a   :  { %685 = shalt.err (!%p682_p10)
}
  0x1b   :  { %s686_s24 = scalar_lea.vmem %s823_s27, 128  ;;  %p691_p12 = scmp.lt.s32.totalorder %s823_s27, %s823_s27 }
  0x1c   :  { %p687_p11 = scmp.ne.s32.totalorder %s823_s27, %s686_s24  ;;  %p692_p13 = scmp.lt.s32.totalorder %s686_s24, %s686_s24 }
  0x1e   :  { %p693_p0 = por %p692_p13, %p691_p12 }
  0x20   :  { %p694_p1 = pnand %p693_p0, %p687_p11 }
  0x22   :  { %697 = shalt.err (!%p694_p1)
}
  0x23   :  { %27 = dma.hbm_to_vmem [thread:$0]  %s948_s0, 128, %s823_s27, [#allocation4], %s774_s13, %s774_s13, %s775_s14  }
  0x24   :  { %s776_s26 = smov [#allocation8]   ;;  %s777_s29 = smov [#allocation9]  }
  0x25   :  { %s47_s28 = sshll.u32 %s776_s26, 4  ;;  %s61_s30 = sshll.u32 %s777_s29, 4  ;;  %s48_s28 = int_to_ptr.vmem [resolvable:$true] %s47_s28  ;;  %s860_s30 = int_to_ptr.vmem [resolvable:$true] %s61_s30 }
  0x26   :  { %s698_s10 = scalar_lea.hbm %s951_s3, 1024 }
  0x27   :  { %p699_p2 = scmp.ne.s32.totalorder %s951_s3, %s698_s10  ;;  %p702_p3 = scmp.lt.u32.totalorder %s698_s10, %s951_s3 }
  0x29   :  { %p704_p4 = pnand %p702_p3, %p699_p2 }
  0x2b   :  { %707 = shalt.err (!%p704_p4)
}
  0x2c   :  { %s708_s0 = scalar_lea.vmem %s48_s28, 1024  ;;  %p713_p6 = scmp.lt.s32.totalorder %s48_s28, %s48_s28 }
  0x2d   :  { %p709_p5 = scmp.ne.s32.totalorder %s48_s28, %s708_s0  ;;  %p714_p7 = scmp.lt.s32.totalorder %s708_s0, %s708_s0 }
  0x2f   :  { %p715_p8 = por %p714_p7, %p713_p6 }
  0x31   :  { %p716_p9 = pnand %p715_p8, %p709_p5 }
  0x33   :  { %719 = shalt.err (!%p716_p9)
}
  0x34   :  { %53 = dma.hbm_to_vmem [thread:$0]  %s951_s3, 1024, %s48_s28, [#allocation7], %s774_s13, %s774_s13, %s775_s14  }
  0x35   :  { %s720_s20 = scalar_lea.hbm %s953_s5, 1024 }
  0x36   :  { %p721_p10 = scmp.ne.s32.totalorder %s953_s5, %s720_s20  ;;  %p724_p11 = scmp.lt.u32.totalorder %s720_s20, %s953_s5 }
  0x38   :  { %p726_p12 = pnand %p724_p11, %p721_p10 }
  0x3a   :  { %729 = shalt.err (!%p726_p12)
}
  0x3b   :  { %s730_s1 = scalar_lea.vmem %s860_s30, 1024  ;;  %p735_p0 = scmp.lt.s32.totalorder %s860_s30, %s860_s30 }
  0x3c   :  { %p731_p13 = scmp.ne.s32.totalorder %s860_s30, %s730_s1  ;;  %p736_p1 = scmp.lt.s32.totalorder %s730_s1, %s730_s1 }
  0x3e   :  { %p737_p2 = por %p736_p1, %p735_p0 }
  0x40   :  { %p738_p3 = pnand %p737_p2, %p731_p13 }
  0x42   :  { %741 = shalt.err (!%p738_p3)
}
  0x43   :  { %67 = dma.hbm_to_vmem [thread:$0]  %s953_s5, 1024, %s860_s30, [#allocation10], %s774_s13, %s774_s13, %s775_s14  }
  0x44   :  { %764 = dma.done.wait [#allocation4], 128  }
  0x45   :  { %765 = vsyncadd [#allocation4], 4294967168 }
  0x46   :  { %766 = dma.done.wait [#allocation7], 2048  }
  0x47   :  { %767 = vsyncadd [#allocation7], 4294965248 }
  0x48   :  { %768 = dma.done.wait [#allocation10], 1024  }
  0x49   :  { %769 = vsyncadd [#allocation10], 4294966272  ;;  %v778_v0 = vmov 0.0   ;;  %vm779_vm0 = vmmov 0   ;;  %v613_v1 = vld [vmem:[#allocation6] sm:$0xff]   ;;  %v614_v2 = vld [vmem:[#allocation6 + $0x8] sm:$0xff]  }
  0x4a   :  { %542 = vmatprep.subr.bf16.mxu0 %v778_v0  ;;  %558 = vmatprep.mubr.msk.bf16.mxu0 %vm779_vm0, %v778_v0  ;;  %v615_v3 = vld [vmem:[#allocation6 + $0x10] sm:$0xff]   ;;  %v622_v4 = vld [vmem:[#allocation8] sm:$0xff]   ;;  %v616_v5 = vld [vmem:[#allocation6 + $0x18] sm:$0xff]  }
  0x4b   :  { %562 = vmatprep.subr.bf16.mxu1 %v778_v0  ;;  %578 = vmatprep.mubr.msk.bf16.mxu1 %vm779_vm0, %v778_v0  ;;  %v623_v6 = vld [vmem:[#allocation8 + $0x8] sm:$0xff]   ;;  %v617_v7 = vld [vmem:[#allocation6 + $0x20] sm:$0xff]   ;;  %v624_v8 = vld [vmem:[#allocation8 + $0x10] sm:$0xff]  }
  0x4c   :  { %543 = vmatpush3.bf16.msra.mxu0 %v613_v1  ;;  %563 = vmatpush3.bf16.msra.mxu1 %v622_v4  ;;  %v618_v9 = vld [vmem:[#allocation6 + $0x28] sm:$0xff]   ;;  %v625_v10 = vld [vmem:[#allocation8 + $0x18] sm:$0xff]   ;;  %v619_v11 = vld [vmem:[#allocation6 + $0x30] sm:$0xff]  }
  0x4d   :  { %544 = vmatprep.subr.bf16.mxu0 %v778_v0  ;;  %564 = vmatprep.subr.bf16.mxu1 %v778_v0  ;;  %v620_v12 = vld [vmem:[#allocation6 + $0x38] sm:$0xff]   ;;  %v626_v14 = vld [vmem:[#allocation8 + $0x20] sm:$0xff]   ;;  %v627_v15 = vld [vmem:[#allocation8 + $0x28] sm:$0xff]  }
  0x4e   :  { %v621_v13 = vld [vmem:[#allocation3] sm:$0xff]   ;;  %v628_v16 = vld [vmem:[#allocation8 + $0x30] sm:$0xff]   ;;  %v630_v18 = vld [vmem:[#allocation9] sm:$0xff]  }
  0x4f   :  { %v629_v17 = vld [vmem:[#allocation8 + $0x38] sm:$0xff]   ;;  %v631_v19 = vld [vmem:[#allocation9 + $0x8] sm:$0xff]   ;;  %v632_v20 = vld [vmem:[#allocation9 + $0x10] sm:$0xff]  }
  0x50   :  { %545 = vmatpush3.bf16.msra.mxu0 %v614_v2  ;;  %565 = vmatpush3.bf16.msra.mxu1 %v623_v6  ;;  %v633_v21 = vld [vmem:[#allocation9 + $0x18] sm:$0xff]   ;;  %v634_v32 = vld [vmem:[#allocation9 + $0x20] sm:$0xff]   ;;  %v635_v33 = vld [vmem:[#allocation9 + $0x28] sm:$0xff]  }
  0x51   :  { %546 = vmatprep.subr.bf16.mxu0 %v778_v0  ;;  %566 = vmatprep.subr.bf16.mxu1 %v778_v0  ;;  %v494_v22 = vld [vmem:[%s950_s2] ss:$0 sm:$0xff]  ;;  %v636_v34 = vld [vmem:[#allocation9 + $0x30] sm:$0xff]  }
  0x52   :  { %v637_v35 = vld [vmem:[#allocation9 + $0x38] sm:$0xff]  }
  0x53   :  { %v495_v36 = vld [vmem:[%s952_s4] ss:$0 sm:$0xff]  ;;  %s780_s4 = smov [#allocation11]  }
  0x54   :  { %547 = vmatpush3.bf16.msra.mxu0 %v615_v3  ;;  %567 = vmatpush3.bf16.msra.mxu1 %v624_v8  ;;  %v504_v46 = vld [vmem:[%s954_s6] ss:$0 sm:$0xff]  ;;  %s471_s29 = sshll.u32 %s780_s4, 4  ;;  %s472_s29 = int_to_ptr.vmem [resolvable:$true] %s471_s29 }
  0x55   :  { %548 = vmatprep.subr.bf16.mxu0 %v778_v0  ;;  %568 = vmatprep.subr.bf16.mxu1 %v778_v0  ;;  %s742_s6 = scalar_lea.vmem %s472_s29, 256  ;;  %p747_p5 = scmp.lt.s32.totalorder %s472_s29, %s472_s29 }
  0x56   :  { %p743_p4 = scmp.ne.s32.totalorder %s472_s29, %s742_s6  ;;  %p748_p6 = scmp.lt.s32.totalorder %s742_s6, %s742_s6 }
  0x58   :  { %549 = vmatpush3.bf16.msra.mxu0 %v616_v5  ;;  %569 = vmatpush3.bf16.msra.mxu1 %v625_v10  ;;  %p749_p7 = por %p748_p6, %p747_p5 }
  0x59   :  { %550 = vmatprep.subr.bf16.mxu0 %v778_v0  ;;  %570 = vmatprep.subr.bf16.mxu1 %v778_v0 }
  0x5a   :  { %p750_p8 = pnand %p749_p7, %p743_p4 }
  0x5c   :  { %551 = vmatpush3.bf16.msra.mxu0 %v617_v7  ;;  %571 = vmatpush3.bf16.msra.mxu1 %v626_v14 }
  0x5d   :  { %552 = vmatprep.subr.bf16.mxu0 %v778_v0  ;;  %572 = vmatprep.subr.bf16.mxu1 %v778_v0 }
  0x60   :  { %553 = vmatpush3.bf16.msra.mxu0 %v618_v9  ;;  %573 = vmatpush3.bf16.msra.mxu1 %v627_v15 }
  0x61   :  { %554 = vmatprep.subr.bf16.mxu0 %v778_v0  ;;  %574 = vmatprep.subr.bf16.mxu1 %v778_v0 }
  0x64   :  { %555 = vmatpush3.bf16.msra.mxu0 %v619_v11  ;;  %575 = vmatpush3.bf16.msra.mxu1 %v628_v16 }
  0x65   :  { %556 = vmatprep.subr.bf16.mxu0 %v778_v0  ;;  %576 = vmatprep.subr.bf16.mxu1 %v778_v0 }
  0x68   :  { %557 = vmatpush3.bf16.msra.mxu0 %v620_v12  ;;  %577 = vmatpush3.bf16.msra.mxu1 %v629_v17 }
  0x69   :  { %582 = vmatprep.subr.bf16.mxu0 %v778_v0 }
  0x6b   :  { %559 = vmatmul.mubr.bf16.vlgmr.msra.gmra.mrb[0].mxu0 %v621_v13 }
  0x6c   :  { %598 = vmatprep.mubr.msk.bf16.mxu0 %vm779_vm0, %v778_v0  ;;  %583 = vmatpush3.bf16.msra.mxu0 %v630_v18 }
  0x6d   :  { %584 = vmatprep.subr.bf16.mxu0 %v778_v0 }
  0x70   :  { %585 = vmatpush3.bf16.msra.mxu0 %v631_v19 }
  0x71   :  { %586 = vmatprep.subr.bf16.mxu0 %v778_v0 }
  0x74   :  { %587 = vmatpush3.bf16.msra.mxu0 %v632_v20 }
  0x75   :  { %588 = vmatprep.subr.bf16.mxu0 %v778_v0 }
  0x78   :  { %589 = vmatpush3.bf16.msra.mxu0 %v633_v21 }
  0x79   :  { %590 = vmatprep.subr.bf16.mxu0 %v778_v0 }
  0x7c   :  { %591 = vmatpush3.bf16.msra.mxu0 %v634_v32 }
  0x7d   :  { %592 = vmatprep.subr.bf16.mxu0 %v778_v0 }
  0x80   :  { %593 = vmatpush3.bf16.msra.mxu0 %v635_v33 }
  0x81   :  { %594 = vmatprep.subr.bf16.mxu0 %v778_v0 }
  0x84   :  { %595 = vmatpush3.bf16.msra.mxu0 %v636_v34 }
  0x85   :  { %596 = vmatprep.subr.bf16.mxu0 %v778_v0 }
  0x88   :  { %597 = vmatpush3.bf16.msra.mxu0 %v637_v35 }
 0x13e   :  { %v197_v23 = vpop.f32.mrb[0].mxu0 }
 0x13f   :  { %v220_v24 = vadd.f32 %v494_v22, %v197_v23  ;;  %v560_v25 = vpop.f32.mrb[1].mxu0 }
 0x140   :  { %v200_v26 = vpop.f32.mrb[2].mxu0 }
 0x141   :  { %v221_v27 = vadd.f32 %v494_v22, %v200_v26  ;;  %v561_v28 = vpop.f32.mrb[3].mxu0  ;;  %638 = vtanh.f32 %v220_v24 }
 0x143   :  { %640 = vtanh.f32 %v221_v27 }
 0x14b   :  { %v639_v29 = vpop.eup %638 }
 0x14d   :  { %v641_v30 = vpop.eup %640 }
 0x14e   :  { %v224_v31 = vpack.c.bf16 %v641_v30, %v639_v29 }
 0x150   :  { %579 = vmatmul.mubr.bf16.vlgmr.msra.gmra.mrb[0].mxu1 %v224_v31 }
 0x223   :  { %v330_v37 = vpop.f32.mrb[0].mxu1 }
 0x224   :  { %v331_v38 = vadd.f32 %v495_v36, %v330_v37  ;;  %v580_v39 = vpop.f32.mrb[1].mxu1 }
 0x225   :  { %v333_v40 = vpop.f32.mrb[2].mxu1 }
 0x226   :  { %v334_v41 = vadd.f32 %v495_v36, %v333_v40  ;;  %v581_v42 = vpop.f32.mrb[3].mxu1  ;;  %642 = vtanh.f32 %v331_v38 }
 0x228   :  { %644 = vtanh.f32 %v334_v41 }
 0x230   :  { %v643_v43 = vpop.eup %642 }
 0x232   :  { %v645_v44 = vpop.eup %644 }
 0x233   :  { %v339_v45 = vpack.c.bf16 %v645_v44, %v643_v43 }
 0x235   :  { %599 = vmatmul.mubr.bf16.vlgmr.msra.gmra.mrb[4].mxu0 %v339_v45 }
 0x308   :  { %v445_v47 = vpop.f32.mrb[4].mxu0 }
 0x309   :  { %v446_v48 = vadd.f32 %v504_v46, %v445_v47  ;;  %v600_v49 = vpop.f32.mrb[5].mxu0 }
 0x30a   :  { %v448_v50 = vpop.f32.mrb[6].mxu0 }
 0x30b   :  { %v513_v51 = vmul.f32 -1.442695, %v446_v48  ;;  %v449_v52 = vadd.f32 %v504_v46, %v448_v50  ;;  %v601_v53 = vpop.f32.mrb[7].mxu0 }
 0x30d   :  { %646 = vpow2.f32 %v513_v51  ;;  %v514_v54 = vmul.f32 -1.442695, %v449_v52 }
 0x30f   :  { %648 = vpow2.f32 %v514_v54 }
 0x317   :  { %v647_v55 = vpop.eup %646 }
 0x318   :  { %v458_v56 = vadd.f32 1.0, %v647_v55 }
 0x319   :  { %v649_v57 = vpop.eup %648 }
 0x31a   :  { %650 = vrcp.f32 %v458_v56  ;;  %v459_v58 = vadd.f32 1.0, %v649_v57 }
 0x31c   :  { %652 = vrcp.f32 %v459_v58 }
 0x324   :  { %v651_v59 = vpop.eup %650 }
 0x325   :  { %464 = vst [vmem:[#allocation11] sm:$0xff] %v651_v59 }
 0x326   :  { %v653_v60 = vpop.eup %652 }
 0x327   :  { %465 = vst [vmem:[#allocation11 + $0x8] sm:$0xff] %v653_v60 }
 0x328   :  { %753 = shalt.err (!%p750_p8)
}
 0x329   :  { %s754_s9 = scalar_lea.hbm %s955_s7, 256 }
 0x32a   :  { %p755_p9 = scmp.ne.s32.totalorder %s955_s7, %s754_s9  ;;  %p758_p10 = scmp.lt.u32.totalorder %s754_s9, %s955_s7 }
 0x32c   :  { %p760_p11 = pnand %p758_p10, %p755_p9 }
 0x32e   :  { %763 = shalt.err (!%p760_p11)
}
 0x32f   :  { %s781_s16 = smov 128   ;;  %s782_s0 = smov 8  }
 0x330   :  { %477 = dma.vmem_to_hbm [thread:$0]  %s472_s29, 256, %s955_s7, [#allocation5], %s781_s16, %s781_s16, %s782_s0  }
 0x331   :  { %770 = dma.done.wait [#allocation5], 256  }
 0x332   :  { %771 = vsyncadd [#allocation5], 4294967040 }
 0x333   :  { %481 = vsyncpa [#allocation4], 1 }
 0x334   :  { %482 = vsyncpa [#allocation7], 1 }
 0x335   :  { %483 = vsyncpa [#allocation10], 1 }
 0x336   :  { %484 = vsyncpa [#allocation5], 1 }

</bundles_post_ra>
